<compile_context>
chip_gen: v5e
topology: v5e:2x2
jax: 0.10.0
libtpu: 0.0.40
codegen_flags: <defaults>
</compile_context>

<pallas_src>
import functools

import jax
import jax.numpy as jnp
from jax import lax
from jax.experimental import pallas as pl
from jax.experimental.pallas import tpu as pltpu


def _round_up(x, m):
    return ((x + m - 1) // m) * m


# ---------------------------------------------------------------------------
# Kernels
# ---------------------------------------------------------------------------

def _convbn_kernel(w_ref, p_ref, shift_ref, out_ref, *, apply_relu):
    # w_ref:     (Cout, K2Cp)  bf16 -- BN-scale-folded weights
    # p_ref:     (K2Cp, TN)    bf16 -- im2col patches for one batch/spatial tile
    # shift_ref: (Cout, 1)     f32  -- folded BN shift (+ conv bias)
    # out_ref:   (Cout, TN)
    acc = lax.dot_general(
        w_ref[...], p_ref[...],
        dimension_numbers=(((1,), (0,)), ((), ())),      # contract over K2Cp
        preferred_element_type=jnp.float32,              # f32 MXU accumulation
    )
    y = acc + shift_ref[...]                             # fused BN shift / bias
    if apply_relu:
        y = jnp.maximum(y, 0.0)                          # fused ReLU
    out_ref[...] = y.astype(out_ref.dtype)               # lane-dense store


def _convbn_kernel_ktiled(w_ref, p_ref, shift_ref, out_ref, acc_ref, *,
                          apply_relu):
    # Same as above but with a K-reduction grid axis (axis 2, "arbitrary") and
    # an f32 VMEM accumulator that stays resident across the K steps.
    k = pl.program_id(2)

    @pl.when(k == 0)
    def _init():
        acc_ref[...] = jnp.zeros_like(acc_ref)

    acc_ref[...] += lax.dot_general(
        w_ref[...], p_ref[...],
        dimension_numbers=(((1,), (0,)), ((), ())),
        preferred_element_type=jnp.float32,
    )

    @pl.when(k == pl.num_programs(2) - 1)
    def _finalize():
        y = acc_ref[...] + shift_ref[...]
        if apply_relu:
            y = jnp.maximum(y, 0.0)
        out_ref[...] = y.astype(out_ref.dtype)


# ---------------------------------------------------------------------------
# Wrapper
# ---------------------------------------------------------------------------

def _pick_spatial_tile(n, target=512):
    """Lane-aligned (multiple-of-128) spatial tile with bounded padding waste."""
    n128 = _round_up(n, 128)
    if n128 <= target:
        return n128                       # single lane-aligned tile
    max_waste = max(n // 8, 127)          # allow <=12.5% zero-padding waste
    for t in range(target, 127, -128):
        if _round_up(n, t) - n <= max_waste:
            return t
    return 128


def conv_module_forward(x, weight, *, conv_bias=None,
                        bn_gamma=None, bn_beta=None, bn_mean=None, bn_var=None,
                        bn_eps=1e-5, stride=1, padding=0, dilation=1, groups=1,
                        norm=True, activate=True, out_dtype=None,
                        compute_dtype=jnp.bfloat16, spatial_tile_target=512,
                        k_tile=None):
    """ConvModule.forward (activate_last=True): ReLU(BN_eval(Conv2d(x))).

    x:      (B, Cin, H, W)
    weight: (Cout, Cin, KH, KW)
    BN is applied with running statistics (inference mode).
    """
    if groups != 1:
        # TODO(synk): grouped convolution (groups > 1) is not implemented in
        # the Pallas path.
        raise NotImplementedError("groups != 1 is not supported")
    if norm and any(v is None for v in (bn_gamma, bn_beta, bn_mean, bn_var)):
        raise ValueError("norm=True requires bn_gamma, bn_beta, bn_mean, bn_var")

    B, Cin, H, W = x.shape
    Cout, Cin_w, KH, KW = weight.shape
    assert Cin_w == Cin, (Cin_w, Cin)
    out_dtype = x.dtype if out_dtype is None else out_dtype

    # --- spatial padding + im2col in the compute dtype (layout plumbing) ----
    xp = jnp.pad(x, ((0, 0), (0, 0), (padding, padding), (padding, padding)))
    xp = xp.astype(compute_dtype)
    Hp, Wp = H + 2 * padding, W + 2 * padding
    OH = (Hp - dilation * (KH - 1) - 1) // stride + 1
    OW = (Wp - dilation * (KW - 1) - 1) // stride + 1
    N = OH * OW

    taps = []
    for kh in range(KH):
        for kw in range(KW):
            win = xp[:, :,
                     kh * dilation: kh * dilation + (OH - 1) * stride + 1: stride,
                     kw * dilation: kw * dilation + (OW - 1) * stride + 1: stride]
            taps.append(win.reshape(B, Cin, N))
    # (Cin major, then kh*KW+kw) matches weight.reshape(Cout, Cin*KH*KW)
    patches = jnp.stack(taps, axis=2).reshape(B, Cin * KH * KW, N)

    # --- fold conv bias + BN scale/shift; scale goes into the weights --------
    f32 = jnp.float32
    bias = jnp.zeros((Cout,), f32) if conv_bias is None else conv_bias.astype(f32)
    w2 = weight.reshape(Cout, Cin * KH * KW).astype(f32)
    if norm:
        scale = bn_gamma.astype(f32) * lax.rsqrt(bn_var.astype(f32) + bn_eps)
        shift = bn_beta.astype(f32) + scale * (bias - bn_mean.astype(f32))
        w2 = w2 * scale[:, None]          # exact fold, done once in XLA
    else:
        shift = bias
    shift2 = shift.reshape(Cout, 1)

    # --- K (contraction) padding / optional K-tiling -------------------------
    K2C = Cin * KH * KW
    sublane_pack = 16 if jnp.dtype(compute_dtype).itemsize == 2 else 8
    if k_tile is None and K2C > 2048:
        k_tile = 512                      # bound VMEM for large Cin (v7x)
    if k_tile is not None:
        k_tile = max(256, _round_up(int(k_tile), 256))
        K2Cp = _round_up(K2C, k_tile)
        nk = K2Cp // k_tile
    else:
        K2Cp = _round_up(K2C, sublane_pack)
        nk = 1
    if nk == 1:
        k_tile = K2Cp

    # --- N (spatial) padding to a lane-aligned uniform tiling ---------------
    TN = _pick_spatial_tile(N, spatial_tile_target)
    Np = _round_up(N, TN)

    w2p = jnp.pad(w2, ((0, 0), (0, K2Cp - K2C))).astype(compute_dtype)
    patches = jnp.pad(patches, ((0, 0), (0, K2Cp - K2C), (0, Np - N)))

    # --- cost estimate + VMEM budget -----------------------------------------
    cbytes = jnp.dtype(compute_dtype).itemsize
    obytes = jnp.dtype(out_dtype).itemsize
    flops = 2 * B * Cout * K2Cp * Np
    bytes_accessed = (patches.size * cbytes + w2p.size * cbytes
                      + B * Cout * Np * obytes + Cout * 4)
    vmem_need = (Cout * k_tile * cbytes * 2            # weight tile (<=2 bufs)
                 + k_tile * TN * cbytes * 2            # patch tile (2 bufs)
                 + Cout * TN * obytes * 2              # output tile (2 bufs)
                 + Cout * 4                            # shift
                 + (Cout * TN * 4 if nk > 1 else 0))   # f32 accumulator
    vmem_limit = int(min(100 << 20, max(32 << 20, 2 * vmem_need)))

    cost = pl.CostEstimate(flops=flops, transcendentals=0,
                           bytes_accessed=bytes_accessed)

    def _call(single_buffer_consts):
        const_kw = ({"pipeline_mode": pl.Buffered(1)}
                    if single_buffer_consts else {})
        if nk > 1:
            kernel = functools.partial(_convbn_kernel_ktiled,
                                       apply_relu=bool(activate))
            grid = (B, Np // TN, nk)
            in_specs = [
                pl.BlockSpec((Cout, k_tile), lambda b, n, k: (0, k)),
                pl.BlockSpec((None, k_tile, TN), lambda b, n, k: (b, k, n)),
                pl.BlockSpec((Cout, 1), lambda b, n, k: (0, 0), **const_kw),
            ]
            out_spec = pl.BlockSpec((None, Cout, TN), lambda b, n, k: (b, 0, n))
            scratch = [pltpu.VMEM((Cout, TN), jnp.float32)]
            dims = ("parallel", "parallel", "arbitrary")
        else:
            kernel = functools.partial(_convbn_kernel,
                                       apply_relu=bool(activate))
            grid = (B, Np // TN)
            in_specs = [
                pl.BlockSpec((Cout, K2Cp), lambda b, n: (0, 0), **const_kw),
                pl.BlockSpec((None, K2Cp, TN), lambda b, n: (b, 0, n)),
                pl.BlockSpec((Cout, 1), lambda b, n: (0, 0), **const_kw),
            ]
            out_spec = pl.BlockSpec((None, Cout, TN), lambda b, n: (b, 0, n))
            scratch = []
            dims = ("parallel", "parallel")

        return pl.pallas_call(
            kernel,
            out_shape=jax.ShapeDtypeStruct((B, Cout, Np), out_dtype),
            grid_spec=pltpu.PrefetchScalarGridSpec(
                num_scalar_prefetch=0,
                grid=grid,
                in_specs=in_specs,
                out_specs=out_spec,
                scratch_shapes=scratch),
            compiler_params=pltpu.CompilerParams(
                dimension_semantics=dims,
                vmem_limit_bytes=vmem_limit),
            cost_estimate=cost,
        )(w2p, patches, shift2)

    out_flat = None
    for single_buf in (True, False):
        try:
            out_flat = _call(single_buf)
            jax.block_until_ready(out_flat)
            break
        except Exception:
            if not single_buf:
                raise
            # pipeline_mode=pl.Buffered(1) not accepted on this runtime;
            # fall back to default double-buffering (correctness unchanged).
            out_flat = None

    return out_flat[:, :, :N].reshape(B, Cout, OH, OW)


# ---------------------------------------------------------------------------
# Pure-JAX reference
# ---------------------------------------------------------------------------

def _reference(x, weight, bn_gamma, bn_beta, bn_mean, bn_var, bn_eps,
               stride, padding, dilation):
    y = lax.conv_general_dilated(
        x.astype(jnp.float32), weight.astype(jnp.float32),
        window_strides=(stride, stride),
        padding=[(padding, padding), (padding, padding)],
        rhs_dilation=(dilation, dilation),
        dimension_numbers=("NCHW", "OIHW", "NCHW"),
        precision=lax.Precision.HIGHEST)
    inv = lax.rsqrt(bn_var + bn_eps)[None, :, None, None]
    y = (y - bn_mean[None, :, None, None]) * inv
    y = bn_gamma[None, :, None, None] * y + bn_beta[None, :, None, None]
    return jnp.maximum(y, 0.0)


def _make_inputs(key, B, Cin, H, W, Cout, K):
    k1, k2, k3, k4, k5, k6 = jax.random.split(key, 6)
    x = jax.random.normal(k1, (B, Cin, H, W), dtype=jnp.float32)
    fan_in = Cin * K * K
    weight = jax.random.normal(k2, (Cout, Cin, K, K), dtype=jnp.float32) \
        * (2.0 / fan_in) ** 0.5
    bn_gamma = jax.random.uniform(k3, (Cout,), jnp.float32, 0.5, 1.5)
    bn_beta = jax.random.normal(k4, (Cout,), jnp.float32) * 0.1
    bn_mean = jax.random.normal(k5, (Cout,), jnp.float32) * 0.1
    bn_var = jax.random.uniform(k6, (Cout,), jnp.float32, 0.5, 1.5)
    return x, weight, bn_gamma, bn_beta, bn_mean, bn_var


if __name__ == "__main__":
    key = jax.random.PRNGKey(0)
    key1, key2 = jax.random.split(key)
    bn_eps = 1e-5
    # bf16 operands with f32 accumulation vs an f32 reference -> small delta.
    tol = 5e-2

    # --- Test 1: default single-K path (B=2, Cin=4, 16x16, Cout=8, 3x3) -----
    B, Cin, H, W, Cout, K = 2, 4, 16, 16, 8, 3
    stride, padding, dilation = 1, 1, 1
    x, weight, g, b_, m, v = _make_inputs(key1, B, Cin, H, W, Cout, K)

    out = conv_module_forward(
        x, weight, bn_gamma=g, bn_beta=b_, bn_mean=m, bn_var=v,
        bn_eps=bn_eps, stride=stride, padding=padding, dilation=dilation,
        norm=True, activate=True)
    out = jax.block_until_ready(out)
    ref = _reference(x, weight, g, b_, m, v, bn_eps, stride, padding, dilation)
    assert out.shape == ref.shape == (B, Cout, H, W), (out.shape, ref.shape)
    err1 = float(jnp.max(jnp.abs(out.astype(jnp.float32) - ref)))
    assert err1 < tol, err1
    assert float(jnp.min(out)) >= 0.0  # ReLU output must be non-negative

    # --- Test 2: exercises N-padding (13x13 -> 169) and the K-tiled path ----
    B2, Cin2, H2, W2, Cout2, K2 = 1, 32, 13, 13, 16, 3
    x2, weight2, g2, b2_, m2, v2 = _make_inputs(key2, B2, Cin2, H2, W2, Cout2, K2)

    out2 = conv_module_forward(
        x2, weight2, bn_gamma=g2, bn_beta=b2_, bn_mean=m2, bn_var=v2,
        bn_eps=bn_eps, stride=1, padding=1, dilation=1,
        norm=True, activate=True, k_tile=256)   # force the K-reduction axis
    out2 = jax.block_until_ready(out2)
    ref2 = _reference(x2, weight2, g2, b2_, m2, v2, bn_eps, 1, 1, 1)
    assert out2.shape == ref2.shape == (B2, Cout2, H2, W2), (out2.shape, ref2.shape)
    err2 = float(jnp.max(jnp.abs(out2.astype(jnp.float32) - ref2)))
    assert err2 < tol, err2
    assert float(jnp.min(out2)) >= 0.0

    print("KERNEL_OK")
</pallas_src>

<mosaic_0001>
module attributes {stable_mosaic.version = 11 : i64} {
  func.func @_convbn_kernel(%arg0: i32, %arg1: i32, %arg2: memref<8x48xbf16, #tpu.memory_space<vmem>>, %arg3: memref<1x48x256xbf16, #tpu.memory_space<vmem>>, %arg4: memref<8x1xf32, #tpu.memory_space<vmem>>, %arg5: memref<1x8x256xf32, #tpu.memory_space<vmem>>) attributes {dimension_semantics = [#tpu.dimension_semantics<parallel>, #tpu.dimension_semantics<parallel>], iteration_bounds = array<i64: 2, 1>, scalar_prefetch = 0 : i64, scratch_operands = 0 : i64, tpu.core_type = #tpu.core_type<tc>, window_params = [{pipeline_mode = #tpu.pipeline_mode<synchronous>, transform_indices = @transform_0, window_bounds = array<i64: 8, 48>}, {transform_indices = @transform_1, window_bounds = array<i64: 1, 48, 256>}, {pipeline_mode = #tpu.pipeline_mode<synchronous>, transform_indices = @transform_2, window_bounds = array<i64: 8, 1>}, {transform_indices = @transform_3, window_bounds = array<i64: 1, 8, 256>}]} {
    %c0 = arith.constant 0 : index
    %c0_0 = arith.constant 0 : index
    %0 = vector.load %arg2[%c0, %c0_0] : memref<8x48xbf16, #tpu.memory_space<vmem>>, vector<8x48xbf16>
    %c0_1 = arith.constant 0 : index
    %c0_2 = arith.constant 0 : index
    %c0_3 = arith.constant 0 : index
    %1 = vector.load %arg3[%c0_1, %c0_2, %c0_3] : memref<1x48x256xbf16, #tpu.memory_space<vmem>>, vector<1x48x256xbf16>
    %2 = vector.shape_cast %1 : vector<1x48x256xbf16> to vector<48x256xbf16>
    %cst = arith.constant dense<0.000000e+00> : vector<8x256xf32>
    %3 = tpu.matmul %0, %2, %cst {dimension_numbers = #tpu.dot_dimension_numbers<[1], [0], [0], [1], [0, 0, 1, 1], [], []>} : vector<8x48xbf16>, vector<48x256xbf16>, vector<8x256xf32> -> vector<8x256xf32>
    %c0_4 = arith.constant 0 : index
    %c0_5 = arith.constant 0 : index
    %4 = vector.load %arg4[%c0_4, %c0_5] : memref<8x1xf32, #tpu.memory_space<vmem>>, vector<8x1xf32>
    %5 = vector.broadcast %4 : vector<8x1xf32> to vector<8x256xf32>
    %6 = arith.addf %3, %5 : vector<8x256xf32>
    %cst_6 = arith.constant 0.000000e+00 : f32
    %7 = vector.broadcast %cst_6 : f32 to vector<8x256xf32>
    %8 = arith.maximumf %6, %7 : vector<8x256xf32>
    %c0_7 = arith.constant 0 : index
    %c0_8 = arith.constant 0 : index
    %c0_9 = arith.constant 0 : index
    %9 = vector.load %arg5[%c0_7, %c0_8, %c0_9] : memref<1x8x256xf32, #tpu.memory_space<vmem>>, vector<1x8x256xf32>
    %10 = vector.shape_cast %9 : vector<1x8x256xf32> to vector<8x256xf32>
    %11 = vector.shape_cast %8 : vector<8x256xf32> to vector<1x8x256xf32>
    tpu.vector_store %arg5[%c0_7, %c0_8, %c0_9], %11 {strides = array<i32>} : memref<1x8x256xf32, #tpu.memory_space<vmem>>, vector<1x8x256xf32>,
    return
  }
  func.func @transform_0(%arg0: i32, %arg1: i32) -> (i32, i32) {
    %c0_i32 = arith.constant 0 : i32
    %c0_i32_0 = arith.constant 0 : i32
    %c0_i32_1 = arith.constant 0 : i32
    return %c0_i32, %c0_i32_0 : i32, i32
  }
  func.func @transform_1(%arg0: i32, %arg1: i32) -> (i32, i32, i32) {
    %c0_i32 = arith.constant 0 : i32
    %c0_i32_0 = arith.constant 0 : i32
    return %arg0, %c0_i32, %arg1 : i32, i32, i32
  }
  func.func @transform_2(%arg0: i32, %arg1: i32) -> (i32, i32) {
    %c0_i32 = arith.constant 0 : i32
    %c0_i32_0 = arith.constant 0 : i32
    %c0_i32_1 = arith.constant 0 : i32
    return %c0_i32, %c0_i32_0 : i32, i32
  }
  func.func @transform_3(%arg0: i32, %arg1: i32) -> (i32, i32, i32) {
    %c0_i32 = arith.constant 0 : i32
    %c0_i32_0 = arith.constant 0 : i32
    return %arg0, %c0_i32, %arg1 : i32, i32, i32
  }
}

module attributes {stable_mosaic.version = 11 : i64} {
  func.func @_convbn_kernel(%arg0: i32, %arg1: i32, %arg2: memref<8x48xbf16, #tpu.memory_space<vmem>>, %arg3: memref<1x48x256xbf16, #tpu.memory_space<vmem>>, %arg4: memref<8x1xf32, #tpu.memory_space<vmem>>, %arg5: memref<1x8x256xf32, #tpu.memory_space<vmem>>) attributes {dimension_semantics = [#tpu.dimension_semantics<parallel>, #tpu.dimension_semantics<parallel>], iteration_bounds = array<i64: 2, 1>, scalar_prefetch = 0 : i64, scratch_operands = 0 : i64, tpu.core_type = #tpu.core_type<tc>, window_params = [{pipeline_mode = #tpu.pipeline_mode<synchronous>, transform_indices = @transform_0, window_bounds = array<i64: 8, 48>}, {transform_indices = @transform_1, window_bounds = array<i64: 1, 48, 256>}, {pipeline_mode = #tpu.pipeline_mode<synchronous>, transform_indices = @transform_2, window_bounds = array<i64: 8, 1>}, {transform_indices = @transform_3, window_bounds = array<i64: 1, 8, 256>}]} {
    %c0 = arith.constant 0 : index
    %c0_0 = arith.constant 0 : index
    %0 = vector.load %arg2[%c0, %c0_0] : memref<8x48xbf16, #tpu.memory_space<vmem>>, vector<8x48xbf16>
    %c0_1 = arith.constant 0 : index
    %c0_2 = arith.constant 0 : index
    %c0_3 = arith.constant 0 : index
    %1 = vector.load %arg3[%c0_1, %c0_2, %c0_3] : memref<1x48x256xbf16, #tpu.memory_space<vmem>>, vector<1x48x256xbf16>
    %2 = vector.shape_cast %1 : vector<1x48x256xbf16> to vector<48x256xbf16>
    %cst = arith.constant dense<0.000000e+00> : vector<8x256xf32>
    %3 = tpu.matmul %0, %2, %cst {dimension_numbers = #tpu.dot_dimension_numbers<[1], [0], [0], [1], [0, 0, 1, 1], [], []>} : vector<8x48xbf16>, vector<48x256xbf16>, vector<8x256xf32> -> vector<8x256xf32>
    %c0_4 = arith.constant 0 : index
    %c0_5 = arith.constant 0 : index
    %4 = vector.load %arg4[%c0_4, %c0_5] : memref<8x1xf32, #tpu.memory_space<vmem>>, vector<8x1xf32>
    %5 = vector.broadcast %4 : vector<8x1xf32> to vector<8x256xf32>
    %6 = arith.addf %3, %5 : vector<8x256xf32>
    %cst_6 = arith.constant 0.000000e+00 : f32
    %7 = vector.broadcast %cst_6 : f32 to vector<8x256xf32>
    %8 = arith.maximumf %6, %7 : vector<8x256xf32>
    %c0_7 = arith.constant 0 : index
    %c0_8 = arith.constant 0 : index
    %c0_9 = arith.constant 0 : index
    %9 = vector.load %arg5[%c0_7, %c0_8, %c0_9] : memref<1x8x256xf32, #tpu.memory_space<vmem>>, vector<1x8x256xf32>
    %10 = vector.shape_cast %9 : vector<1x8x256xf32> to vector<8x256xf32>
    %11 = vector.shape_cast %8 : vector<8x256xf32> to vector<1x8x256xf32>
    tpu.vector_store %arg5[%c0_7, %c0_8, %c0_9], %11 {strides = array<i32>} : memref<1x8x256xf32, #tpu.memory_space<vmem>>, vector<1x8x256xf32>,
    return
  }
  func.func @transform_0(%arg0: i32, %arg1: i32) -> (i32, i32) {
    %c0_i32 = arith.constant 0 : i32
    %c0_i32_0 = arith.constant 0 : i32
    %c0_i32_1 = arith.constant 0 : i32
    return %c0_i32, %c0_i32_0 : i32, i32
  }
  func.func @transform_1(%arg0: i32, %arg1: i32) -> (i32, i32, i32) {
    %c0_i32 = arith.constant 0 : i32
    %c0_i32_0 = arith.constant 0 : i32
    return %arg0, %c0_i32, %arg1 : i32, i32, i32
  }
  func.func @transform_2(%arg0: i32, %arg1: i32) -> (i32, i32) {
    %c0_i32 = arith.constant 0 : i32
    %c0_i32_0 = arith.constant 0 : i32
    %c0_i32_1 = arith.constant 0 : i32
    return %c0_i32, %c0_i32_0 : i32, i32
  }
  func.func @transform_3(%arg0: i32, %arg1: i32) -> (i32, i32, i32) {
    %c0_i32 = arith.constant 0 : i32
    %c0_i32_0 = arith.constant 0 : i32
    return %arg0, %c0_i32, %arg1 : i32, i32, i32
  }
}

</mosaic_0001>

<bundles_post_ra>
// kernel: tpu_custom_call.1
= control target key start
LH: loop header
LB: loop body
LE: loop exit
PB: predicated region body
PF: predicated region fallthrough
CT: control target
= control target key end

     0   :  { %8 = vsyncpa [#allocation3], 0  ;;  %s770_s0 = inlined_call_operand.vmem [shape: bf16[8,48], index: 0, kind: input, shape index: {}]   ;;  %s771_s1 = inlined_call_operand.hbm [shape: bf16[2,48,256], index: 1, kind: input, shape index: {}]   ;;  %s772_s2 = inlined_call_operand.vmem [shape: f32[8,1], index: 2, kind: input, shape index: {}]   ;;  %s773_s3 = inlined_call_operand.hbm [shape: f32[2,8,256], index: 3, kind: output, shape index: {}]  }
   0x1   :  { %10 = vsyncpa [#allocation3 + $0x1], 0 }
   0x2   :  { %11 = vsyncpa [#allocation4], 0 }
   0x3   :  { %13 = vsyncpa [#allocation4 + $0x1], 0  ;;  %s643_s12 = smov 0   ;;  %s645_s13 = smov 0  }
   0x4   :  { %s647_s14 = smov 0   ;;  %s649_s15 = smov 0  }
   0x5   :  { %s651_s16 = smov 0   ;;  %s653_s17 = smov 0  }
   0x6 LB: > { %s392_s18 = sadd.s32 4294967295, %s618_s17   ;;  %s393_s19 = sadd.s32 4294967294, %s618_s17   ;;  %s618_s17 = sphi %s653_s17, %s19_s17   ;;  %s614_s16 = sphi %s651_s16, %s782_s16   ;;  %s610_s15 = sphi %s649_s15, %s781_s15   ;;  %s606_s14 = sphi %s647_s14, %s780_s14   ;;  %s602_s13 = sphi %s645_s13, %s779_s13   ;;  %s598_s12 = sphi %s643_s12, %s778_s12  }
   0x7   : > { %s31_s20 = sadd.s32 1, %s614_s16  ;;  %s61_s21 = sadd.s32 1, %s606_s14 }
   0x8   : > { %p33_p0 = scmp.ge.s32.totalorder %s31_s20, 2  ;;  %p68_p1 = scmp.ne.s32.totalorder %s606_s14, %s602_s13 }
   0x9   : > { %p69_p2 = scmp.eq.s32.totalorder %s618_s17, 0  ;;  %p74_p3 = scmp.ne.s32.totalorder %s602_s13, %s598_s12 }
   0xa   : > { %s784_s20 = smov (%p33_p0, %s31_s20), 0  ;;  %p75_p5 = scmp.eq.s32.totalorder %s392_s18, 0 }
   0xb   : > { %p684_p4 = por %p69_p2, %p68_p1  ;;  %s56_s23 = ssub.s32 %s614_s16, %s784_s20 }
   0xc   : > { %p121_p6 = scmp.eq.s32.totalorder %s392_s18, 1  ;;  %p59_p7 = scmp.eq.s32.totalorder %s56_s23, 0 }
   0xd   : > { %p690_p8 = por %p75_p5, %p74_p3  ;;  %p127_p10 = scmp.eq.s32.totalorder %s393_s19, 1 }
   0xe   : > { %p694_p9 = por %p121_p6, %p68_p1  ;;  %p395_p12 = scmp.ge.s32.totalorder %s618_s17, 2 }
   0xf   : > { %s699_s26 = scalar_select %p59_p7, %s606_s14, %s61_s21  }
  0x10   : > { %p701_p11 = por %p127_p10, %p74_p3  ;;  %p452_p13 = scmp.lt.s32.totalorder %s618_s17, 2 }
  0x11   : > { %s153_s28 = sand.u32 1, %s606_s14   ;;  %s438_s30 = smul.u32 48, %s614_s16 }
  0x12   : > { %s437_s29 = smul.u32 48, %s153_s28  ;;  %p445_p0 = pnand %p452_p13, %p684_p4 }
  0x13   : > { %s164_s6 = scalar_lea.hbm %s771_s1, %s438_s30  ;;  %p397_p1 = scmp.ge.s32.totalorder %s618_s17, 1 }
  0x14   : > { %s157_s7 = scalar_lea.vmem [#allocation2], %s437_s29  ;;  %s165_s9 = sshll.u32 %s164_s6, 4  ;;  %s166_s9 = int_to_ptr.hbm [resolvable:$true] %s165_s9 }
  0x15   : > { %s167_s8 = sshll.u32 %s157_s7, 4  ;;  %s154_s10 = scalar_lea.sflag [#allocation3], %s153_s28  ;;  %s168_s8 = int_to_ptr.vmem [resolvable:$true] %s167_s8 }
  0x16   : > { %s620_s11 = smov 128   ;;  %s621_s18 = smov 8  }
  0x17   : > { %447 = dma.hbm_to_vmem [thread:$0]  (!%p445_p0), %s166_s9, 768, %s168_s8, %s154_s10, %s620_s11, %s620_s11, %s621_s18  }
  0x18   : > { %p175_p2 = scmp.lt.s32.totalorder %s618_s17, 3 }
  0x1a   : > { %p176_p3 = pnand %p397_p1, %p175_p2 }
  0x1b   : > { %s717_s19 = sand.u32 (!%p176_p3), 1, %s602_s13  }
  0x1c   : > { %179 = sbr.rel (%p176_p3) target bundleno = 183 (0xb7), region = 32  ;;  %s182_s22 = scalar_lea.sflag (!%p176_p3), [#allocation3], %s717_s19 }
  0x1d   : > { %s439_s21 = smul.u32 (!%p176_p3), 48, %s717_s19 }
  0x1f   : > { %s185_s23 = scalar_lea.vmem (!%p176_p3), [#allocation2], %s439_s21 }
  0x21   : > { %589 = dma.done.wait (%p690_p8), %s182_s22, 768  }
  0x22   : > { %591 = vsyncadd (%p690_p8), %s182_s22, 4294966528  ;;  %v622_v0 = vmov 0   ;;  %v417_v1 = vld [vmem:[%s185_s23 + $0x20] sm:$0xf]  ;;  %v435_v2 = vld [vmem:[%s185_s23 + $0x24] sm:$0xf0] }
  0x23   : > { %505 = vset.pattern.permute.xlu0 %v622_v0  ;;  %v434_v3 = vld [vmem:[%s185_s23 + $0x24] sm:$0xf]  ;;  %v418_v4 = vor.u32 %v435_v2, %v417_v1  ;;  %v419_v5 = vld [vmem:[%s185_s23 + $0x28] sm:$0xf0]  ;;  %v409_v6 = vld [vmem:[%s185_s23 + $0x10] sm:$0xf] }
  0x24   : > { %v433_v7 = vld [vmem:[%s185_s23 + $0x14] sm:$0xf0]  ;;  %v422_v8 = vor.u32 %v434_v3, %v419_v5  ;;  %v432_v9 = vld [vmem:[%s185_s23 + $0x14] sm:$0xf]  ;;  %v411_v10 = vld [vmem:[%s185_s23 + $0x18] sm:$0xf0] }
  0x25   : > { %264 = vmatpush.bf16.msra.mxu0 %v418_v4  ;;  %v410_v11 = vor.u32 %v433_v7, %v409_v6  ;;  %v414_v12 = vor.u32 %v432_v9, %v411_v10  ;;  %v401_v13 = vld [vmem:[%s185_s23] sm:$0xf]  ;;  %v431_v14 = vld [vmem:[%s185_s23 + $0x4] sm:$0xf0]  ;;  %v430_v16 = vld [vmem:[%s185_s23 + $0x4] sm:$0xf] }
  0x26   : > { %277 = vmatpush.bf16.msra.mxu1 %v422_v8  ;;  %v219_v15 = vld [vmem:[%s772_s2] sm:$0xff]  ;;  %v403_v17 = vld [vmem:[%s185_s23 + $0x8] sm:$0xf0]  ;;  %v402_v18 = vor.u32 %v431_v14, %v401_v13  ;;  %vm255_vm0 = vcmask 392192   ;;  %s398_s4 = sshll.u32 %s717_s19, 4  ;;  %s436_s5 = sshll.u32 %s610_s15, 4 }
  0x27   : > { %222 = vperm.xlu0 %505, %v219_v15   ;;  %v406_v19 = vor.u32 %v430_v16, %v403_v17  ;;  %v212_v20 = vld [vmem:[%s770_s0] sm:$0xf]  ;;  %s303_s8 = scalar_lea.hbm %s773_s3, %s436_s5  ;;  %s208_s9 = scalar_lea.vmem [#allocation5], %s398_s4 }
  0x28   : > { %s305_s10 = sshll.u32 %s208_s9, 4  ;;  %s307_s11 = sshll.u32 %s303_s8, 4  ;;  %s306_s10 = int_to_ptr.vmem [resolvable:$true] %s305_s10  ;;  %s308_s11 = int_to_ptr.hbm [resolvable:$true] %s307_s11 }
  0x29   : > { %265 = vmatpush.bf16.msra.mxu0 %v410_v11  ;;  %s290_s15 = scalar_lea.sflag [#allocation4], %s717_s19  ;;  %s550_s18 = sshra.s32 %s308_s11, 4  ;;  %s551_s18 = int_to_ptr.hbm [resolvable:$true] %s550_s18 }
  0x2a   : > { %278 = vmatpush.bf16.msra.mxu1 %v414_v12  ;;  %s552_s21 = scalar_lea.hbm %s551_s18, 16  ;;  %s556_s24 = scalar_lea.hbm %s773_s3, 32 }
  0x2b   : > { %p553_p4 = scmp.ne.s32.totalorder %s551_s18, %s552_s21  ;;  %p557_p7 = scmp.lt.s32.totalorder %s551_s18, %s773_s3 }
  0x2c   : > { %p558_p8 = scmp.lt.s32.totalorder %s556_s24, %s552_s21 }
  0x2d   : > { %266 = vmatpush.bf16.msra.mxu0 %v402_v18  ;;  %p554_p5 = pnand %p553_p4, %p694_p9 }
  0x2e   : > { %279 = vmatpush.bf16.msra.mxu1 %v406_v19  ;;  %p559_p10 = por %p558_p8, %p557_p7 }
  0x2f   : > { %p555_p6 = pneg %p554_p5 }
  0x30   : > { %423 = vmatmul.msk.bf16.vlgmr.msra.gmra.mxu0 %vm255_vm0, %v212_v20 }
  0x31   : > { %424 = vmatmul.msk.bf16.vlgmr.msra.gmra.mxu1 %vm255_vm0, %v212_v20  ;;  %p560_p13 = pnand %p559_p10, %p555_p6 }
  0x99   : > { %v223_v21 = vpop.permute.xlu0 %222 }
  0xad   : > { %v268_v22 = vpop.f32.mrf.mxu0 }
  0xae   : > { %v269_v23 = vadd.f32 %v268_v22, %v223_v21  ;;  %v281_v24 = vpop.f32.mrf.mxu1 }
  0xaf   : > { %v282_v25 = vadd.f32 %v281_v24, %v223_v21 }
  0xb0   : > { %v285_v26 = vmax.f32 %v269_v23, 0.0 }
  0xb1   : > { %v286_v27 = vmax.f32 %v282_v25, 0.0 }
  0xb2   : > { %287 = vst [vmem:[%s208_s9] sm:$0xff] %v285_v26 }
  0xb3   : > { %288 = vst [vmem:[%s208_s9 + $0x8] sm:$0xff] %v286_v27 }
  0xb4   : > { %563 = shalt.err (!%p560_p13)
}
  0xb5   : > { %442 = dma.vmem_to_hbm [thread:$0]  (%p694_p9), %s306_s10, 256, %s308_s11, %s290_s15   ;;  %v270_v28 = vpop.f32.mrf.mxu0 }
  0xb6   : > { %v283_v29 = vpop.f32.mrf.mxu1 }
  0xb7 PF: > { %s319_s19 = sand.u32 1, %s598_s12   ;;  %p449_p0 = pnand %p395_p12, %p701_p11 }
  0xb8   : > { %s320_s30 = scalar_lea.sflag [#allocation4], %s319_s19 }
  0xb9   : > { %p450_p1 = pneg %p449_p0 }
  0xbb   : > { %593 = dma.done.wait (%p450_p1), %s320_s30, 256  }
  0xbc   : > { %595 = vsyncadd (%p450_p1), %s320_s30, 4294967040  ;;  %s19_s17 = sadd.s32 1, %s618_s17   ;;  %s778_s12 = smov %s602_s13 }
  0xbd   : > { %p16_p2 = scmp.ge.s32.totalorder %s19_s17, 4   ;;  %s779_s13 = smov %s606_s14 }
  0xbe   : > { %s780_s14 = smov %s699_s26  ;;  %s781_s15 = smov %s614_s16 }
  0xbf   : > { %s782_s16 = smov %s784_s20  ;;  %18 = sbr.rel (!%p16_p2) target bundleno = 6 (0x6), region = 77 }
  0xc4   :  { %326 = vsyncpa [#allocation3], 1 }
  0xc5   :  { %328 = vsyncpa [#allocation3 + $0x1], 1 }
  0xc6   :  { %329 = vsyncpa [#allocation4], 1 }
  0xc7   :  { %331 = vsyncpa [#allocation4 + $0x1], 1 }

// kernel: tpu_custom_call.1
= control target key start
LH: loop header
LB: loop body
LE: loop exit
PB: predicated region body
PF: predicated region fallthrough
CT: control target
= control target key end

     0   :  { %8 = vsyncpa [#allocation3], 0  ;;  %s770_s0 = inlined_call_operand.vmem [shape: bf16[8,48], index: 0, kind: input, shape index: {}]   ;;  %s771_s1 = inlined_call_operand.hbm [shape: bf16[2,48,256], index: 1, kind: input, shape index: {}]   ;;  %s772_s2 = inlined_call_operand.vmem [shape: f32[8,1], index: 2, kind: input, shape index: {}]   ;;  %s773_s3 = inlined_call_operand.hbm [shape: f32[2,8,256], index: 3, kind: output, shape index: {}]  }
   0x1   :  { %10 = vsyncpa [#allocation3 + $0x1], 0 }
   0x2   :  { %11 = vsyncpa [#allocation4], 0 }
   0x3   :  { %13 = vsyncpa [#allocation4 + $0x1], 0  ;;  %s643_s12 = smov 0   ;;  %s645_s13 = smov 0  }
   0x4   :  { %s647_s14 = smov 0   ;;  %s649_s15 = smov 0  }
   0x5   :  { %s651_s16 = smov 0   ;;  %s653_s17 = smov 0  }
   0x6 LB: > { %s392_s18 = sadd.s32 4294967295, %s618_s17   ;;  %s393_s19 = sadd.s32 4294967294, %s618_s17   ;;  %s618_s17 = sphi %s653_s17, %s19_s17   ;;  %s614_s16 = sphi %s651_s16, %s782_s16   ;;  %s610_s15 = sphi %s649_s15, %s781_s15   ;;  %s606_s14 = sphi %s647_s14, %s780_s14   ;;  %s602_s13 = sphi %s645_s13, %s779_s13   ;;  %s598_s12 = sphi %s643_s12, %s778_s12  }
   0x7   : > { %s31_s20 = sadd.s32 1, %s614_s16  ;;  %s61_s21 = sadd.s32 1, %s606_s14 }
   0x8   : > { %p33_p0 = scmp.ge.s32.totalorder %s31_s20, 2  ;;  %p68_p1 = scmp.ne.s32.totalorder %s606_s14, %s602_s13 }
   0x9   : > { %p69_p2 = scmp.eq.s32.totalorder %s618_s17, 0  ;;  %p74_p3 = scmp.ne.s32.totalorder %s602_s13, %s598_s12 }
   0xa   : > { %s784_s20 = smov (%p33_p0, %s31_s20), 0  ;;  %p75_p5 = scmp.eq.s32.totalorder %s392_s18, 0 }
   0xb   : > { %p684_p4 = por %p69_p2, %p68_p1  ;;  %s56_s23 = ssub.s32 %s614_s16, %s784_s20 }
   0xc   : > { %p121_p6 = scmp.eq.s32.totalorder %s392_s18, 1  ;;  %p59_p7 = scmp.eq.s32.totalorder %s56_s23, 0 }
   0xd   : > { %p690_p8 = por %p75_p5, %p74_p3  ;;  %p127_p10 = scmp.eq.s32.totalorder %s393_s19, 1 }
   0xe   : > { %p694_p9 = por %p121_p6, %p68_p1  ;;  %p395_p12 = scmp.ge.s32.totalorder %s618_s17, 2 }
   0xf   : > { %s699_s26 = scalar_select %p59_p7, %s606_s14, %s61_s21  }
  0x10   : > { %p701_p11 = por %p127_p10, %p74_p3  ;;  %p452_p13 = scmp.lt.s32.totalorder %s618_s17, 2 }
  0x11   : > { %s153_s28 = sand.u32 1, %s606_s14   ;;  %s438_s30 = smul.u32 48, %s614_s16 }
  0x12   : > { %s437_s29 = smul.u32 48, %s153_s28  ;;  %p445_p0 = pnand %p452_p13, %p684_p4 }
  0x13   : > { %s164_s6 = scalar_lea.hbm %s771_s1, %s438_s30  ;;  %p397_p1 = scmp.ge.s32.totalorder %s618_s17, 1 }
  0x14   : > { %s157_s7 = scalar_lea.vmem [#allocation2], %s437_s29  ;;  %s165_s9 = sshll.u32 %s164_s6, 4  ;;  %s166_s9 = int_to_ptr.hbm [resolvable:$true] %s165_s9 }
  0x15   : > { %s167_s8 = sshll.u32 %s157_s7, 4  ;;  %s154_s10 = scalar_lea.sflag [#allocation3], %s153_s28  ;;  %s168_s8 = int_to_ptr.vmem [resolvable:$true] %s167_s8 }
  0x16   : > { %s620_s11 = smov 128   ;;  %s621_s18 = smov 8  }
  0x17   : > { %447 = dma.hbm_to_vmem [thread:$0]  (!%p445_p0), %s166_s9, 768, %s168_s8, %s154_s10, %s620_s11, %s620_s11, %s621_s18  }
  0x18   : > { %p175_p2 = scmp.lt.s32.totalorder %s618_s17, 3 }
  0x1a   : > { %p176_p3 = pnand %p397_p1, %p175_p2 }
  0x1b   : > { %s717_s19 = sand.u32 (!%p176_p3), 1, %s602_s13  }
  0x1c   : > { %179 = sbr.rel (%p176_p3) target bundleno = 183 (0xb7), region = 32  ;;  %s182_s22 = scalar_lea.sflag (!%p176_p3), [#allocation3], %s717_s19 }
  0x1d   : > { %s439_s21 = smul.u32 (!%p176_p3), 48, %s717_s19 }
  0x1f   : > { %s185_s23 = scalar_lea.vmem (!%p176_p3), [#allocation2], %s439_s21 }
  0x21   : > { %589 = dma.done.wait (%p690_p8), %s182_s22, 768  }
  0x22   : > { %591 = vsyncadd (%p690_p8), %s182_s22, 4294966528  ;;  %v622_v0 = vmov 0   ;;  %v417_v1 = vld [vmem:[%s185_s23 + $0x20] sm:$0xf]  ;;  %v435_v2 = vld [vmem:[%s185_s23 + $0x24] sm:$0xf0] }
  0x23   : > { %505 = vset.pattern.permute.xlu0 %v622_v0  ;;  %v434_v3 = vld [vmem:[%s185_s23 + $0x24] sm:$0xf]  ;;  %v418_v4 = vor.u32 %v435_v2, %v417_v1  ;;  %v419_v5 = vld [vmem:[%s185_s23 + $0x28] sm:$0xf0]  ;;  %v409_v6 = vld [vmem:[%s185_s23 + $0x10] sm:$0xf] }
  0x24   : > { %v433_v7 = vld [vmem:[%s185_s23 + $0x14] sm:$0xf0]  ;;  %v422_v8 = vor.u32 %v434_v3, %v419_v5  ;;  %v432_v9 = vld [vmem:[%s185_s23 + $0x14] sm:$0xf]  ;;  %v411_v10 = vld [vmem:[%s185_s23 + $0x18] sm:$0xf0] }
  0x25   : > { %264 = vmatpush.bf16.msra.mxu0 %v418_v4  ;;  %v410_v11 = vor.u32 %v433_v7, %v409_v6  ;;  %v414_v12 = vor.u32 %v432_v9, %v411_v10  ;;  %v401_v13 = vld [vmem:[%s185_s23] sm:$0xf]  ;;  %v431_v14 = vld [vmem:[%s185_s23 + $0x4] sm:$0xf0]  ;;  %v430_v16 = vld [vmem:[%s185_s23 + $0x4] sm:$0xf] }
  0x26   : > { %277 = vmatpush.bf16.msra.mxu1 %v422_v8  ;;  %v219_v15 = vld [vmem:[%s772_s2] sm:$0xff]  ;;  %v403_v17 = vld [vmem:[%s185_s23 + $0x8] sm:$0xf0]  ;;  %v402_v18 = vor.u32 %v431_v14, %v401_v13  ;;  %vm255_vm0 = vcmask 392192   ;;  %s398_s4 = sshll.u32 %s717_s19, 4  ;;  %s436_s5 = sshll.u32 %s610_s15, 4 }
  0x27   : > { %222 = vperm.xlu0 %505, %v219_v15   ;;  %v406_v19 = vor.u32 %v430_v16, %v403_v17  ;;  %v212_v20 = vld [vmem:[%s770_s0] sm:$0xf]  ;;  %s303_s8 = scalar_lea.hbm %s773_s3, %s436_s5  ;;  %s208_s9 = scalar_lea.vmem [#allocation5], %s398_s4 }
  0x28   : > { %s305_s10 = sshll.u32 %s208_s9, 4  ;;  %s307_s11 = sshll.u32 %s303_s8, 4  ;;  %s306_s10 = int_to_ptr.vmem [resolvable:$true] %s305_s10  ;;  %s308_s11 = int_to_ptr.hbm [resolvable:$true] %s307_s11 }
  0x29   : > { %265 = vmatpush.bf16.msra.mxu0 %v410_v11  ;;  %s290_s15 = scalar_lea.sflag [#allocation4], %s717_s19  ;;  %s550_s18 = sshra.s32 %s308_s11, 4  ;;  %s551_s18 = int_to_ptr.hbm [resolvable:$true] %s550_s18 }
  0x2a   : > { %278 = vmatpush.bf16.msra.mxu1 %v414_v12  ;;  %s552_s21 = scalar_lea.hbm %s551_s18, 16  ;;  %s556_s24 = scalar_lea.hbm %s773_s3, 32 }
  0x2b   : > { %p553_p4 = scmp.ne.s32.totalorder %s551_s18, %s552_s21  ;;  %p557_p7 = scmp.lt.s32.totalorder %s551_s18, %s773_s3 }
  0x2c   : > { %p558_p8 = scmp.lt.s32.totalorder %s556_s24, %s552_s21 }
  0x2d   : > { %266 = vmatpush.bf16.msra.mxu0 %v402_v18  ;;  %p554_p5 = pnand %p553_p4, %p694_p9 }
  0x2e   : > { %279 = vmatpush.bf16.msra.mxu1 %v406_v19  ;;  %p559_p10 = por %p558_p8, %p557_p7 }
  0x2f   : > { %p555_p6 = pneg %p554_p5 }
  0x30   : > { %423 = vmatmul.msk.bf16.vlgmr.msra.gmra.mxu0 %vm255_vm0, %v212_v20 }
  0x31   : > { %424 = vmatmul.msk.bf16.vlgmr.msra.gmra.mxu1 %vm255_vm0, %v212_v20  ;;  %p560_p13 = pnand %p559_p10, %p555_p6 }
  0x99   : > { %v223_v21 = vpop.permute.xlu0 %222 }
  0xad   : > { %v268_v22 = vpop.f32.mrf.mxu0 }
  0xae   : > { %v269_v23 = vadd.f32 %v268_v22, %v223_v21  ;;  %v281_v24 = vpop.f32.mrf.mxu1 }
  0xaf   : > { %v282_v25 = vadd.f32 %v281_v24, %v223_v21 }
  0xb0   : > { %v285_v26 = vmax.f32 %v269_v23, 0.0 }
  0xb1   : > { %v286_v27 = vmax.f32 %v282_v25, 0.0 }
  0xb2   : > { %287 = vst [vmem:[%s208_s9] sm:$0xff] %v285_v26 }
  0xb3   : > { %288 = vst [vmem:[%s208_s9 + $0x8] sm:$0xff] %v286_v27 }
  0xb4   : > { %563 = shalt.err (!%p560_p13)
}
  0xb5   : > { %442 = dma.vmem_to_hbm [thread:$0]  (%p694_p9), %s306_s10, 256, %s308_s11, %s290_s15   ;;  %v270_v28 = vpop.f32.mrf.mxu0 }
  0xb6   : > { %v283_v29 = vpop.f32.mrf.mxu1 }
  0xb7 PF: > { %s319_s19 = sand.u32 1, %s598_s12   ;;  %p449_p0 = pnand %p395_p12, %p701_p11 }
  0xb8   : > { %s320_s30 = scalar_lea.sflag [#allocation4], %s319_s19 }
  0xb9   : > { %p450_p1 = pneg %p449_p0 }
  0xbb   : > { %593 = dma.done.wait (%p450_p1), %s320_s30, 256  }
  0xbc   : > { %595 = vsyncadd (%p450_p1), %s320_s30, 4294967040  ;;  %s19_s17 = sadd.s32 1, %s618_s17   ;;  %s778_s12 = smov %s602_s13 }
  0xbd   : > { %p16_p2 = scmp.ge.s32.totalorder %s19_s17, 4   ;;  %s779_s13 = smov %s606_s14 }
  0xbe   : > { %s780_s14 = smov %s699_s26  ;;  %s781_s15 = smov %s614_s16 }
  0xbf   : > { %s782_s16 = smov %s784_s20  ;;  %18 = sbr.rel (!%p16_p2) target bundleno = 6 (0x6), region = 77 }
  0xc4   :  { %326 = vsyncpa [#allocation3], 1 }
  0xc5   :  { %328 = vsyncpa [#allocation3 + $0x1], 1 }
  0xc6   :  { %329 = vsyncpa [#allocation4], 1 }
  0xc7   :  { %331 = vsyncpa [#allocation4 + $0x1], 1 }

</bundles_post_ra>
